<compile_context>
chip_gen: v6e
topology: v6e:2x2x1
jax: 0.10.0
libtpu: 0.0.40
codegen_flags: <defaults>
</compile_context>

<pallas_src>
import jax
import jax.numpy as jnp
from jax import lax
from jax.experimental import pallas as pl
from jax.experimental.pallas import tpu as pltpu

LENGTH = 96
FEATURE_DIM = 32
HIDDEN = 64
NUM_HEADS = 4       # only affects head splitting inside the MHA; result-invariant here
BATCH = 2

# ---- packed-weight slab layout: (136, 128) f32, lane-dense -------------------
# rows 0:96    lanes   0:32  W_lin^T  (96,32)  [pos enc folded into its bias]
#              lanes  32:96  W_h1^T   (96,64)
#              lanes 96:128  W_h2^T   (64,32)  in rows 0:64 (rows 64:96 zero)
# rows 96:128  lanes   0:32  W_q^T    (32,32)
#              lanes  32:64  W_k'     (32,32)  [= Wv_mha^T Wo^T Wk_ca^T folded]
#              lanes  64:96  W_v'     (32,32)  [= Wv_mha^T Wo^T Wv_ca^T folded]
# row 128      lanes 0:32 b_lin' | 32:96 b_h1 | 96:128 b_h2
# row 129      lanes 0:32 b_q    | 32:64 b_k' | 64:96  b_v'
_R_W1 = 0
_R_QKV = LENGTH                      # 96
_R_BIAS = LENGTH + FEATURE_DIM       # 128
_ROWS = 136                          # padded to a multiple of 8 sublanes
_LANES = 128


def tsm_kernel(x_ref, w_ref, out_ref):
    # x_ref: (2B, 96)  rows 0:B = tou, rows B:2B = holiday
    # w_ref: (136, 128) packed weight slab
    # out_ref: (B, 32)
    B = out_ref.shape[0]
    D = FEATURE_DIM

    w1 = w_ref[_R_W1:_R_W1 + LENGTH, :]                  # (96, 128)
    w_qkv = w_ref[_R_QKV:_R_QKV + D, :]                  # (32, 128)
    biases = w_ref[_R_BIAS:_R_BIAS + 2, :]                # (2, 128)
    bias_a = biases[0:1, :]
    bias_b = biases[1:2, :]

    # ---- fused stage 1: [tou; holiday] (2B,96) @ [W_lin | W_h1 | W_h2pad] ----
    y = jnp.dot(x_ref[...], w1, preferred_element_type=jnp.float32) + bias_a   # (2B,128)
    tou_out = jnp.maximum(y[0:B, 0:D], 0.0)                                    # (B,32)
    h = jnp.maximum(y[B:2 * B, D:D + HIDDEN], 0.0)                             # (B,64)

    # ---- holiday MLP second layer: (B,64) @ (64,32) --------------------------
    w_h2 = w1[0:HIDDEN, 3 * D:4 * D]                                           # (64,32)
    feat_holiday = (jnp.dot(h, w_h2, preferred_element_type=jnp.float32)
                    + bias_a[:, 3 * D:4 * D])                                  # (B,32)

    # ---- fused stage 2: [tou_out; feat_holiday] (2B,32) @ [W_q | W_k' | W_v']
    z = jnp.concatenate([tou_out, feat_holiday], axis=0)                       # (2B,32)
    qkv = jnp.dot(z, w_qkv, preferred_element_type=jnp.float32) + bias_b       # (2B,128)
    q = qkv[0:B, 0:D]
    k = qkv[B:2 * B, D:2 * D]
    v = qkv[B:2 * B, 2 * D:3 * D]

    # ---- cross attention: (B,B) softmax over the batch axis -------------------
    # contract on dim 1 of both operands -> no materialized k.T
    scores = lax.dot_general(q, k, dimension_numbers=(((1,), (1,)), ((), ())),
                             preferred_element_type=jnp.float32)               # (B,B)
    scores = scores / jnp.sqrt(jnp.float32(D))
    scores = scores - jnp.max(scores, axis=-1, keepdims=True)
    e = jnp.exp(scores)
    attn = e / jnp.sum(e, axis=-1, keepdims=True)       # exact divide: (B,B) is tiny
    out_ref[...] = jnp.dot(attn, v, preferred_element_type=jnp.float32)        # (B,32)


def init_params(key):
    """Deterministic synthetic parameters with PyTorch (out, in) weight layout."""
    def dense(k, out_f, in_f, scale=0.05):
        kw, kb = jax.random.split(k)
        w = jax.random.normal(kw, (out_f, in_f), jnp.float32) * scale
        b = jax.random.normal(kb, (out_f,), jnp.float32) * scale
        return w, b

    keys = jax.random.split(key, 16)
    params = {}
    params["linear"] = dense(keys[0], FEATURE_DIM, LENGTH)
    for i, name in enumerate(["time", "day", "holiday", "weather"]):
        params[f"mlp_{name}_1"] = dense(keys[1 + 2 * i], HIDDEN, LENGTH)
        params[f"mlp_{name}_2"] = dense(keys[2 + 2 * i], FEATURE_DIM, HIDDEN)
    params["mha_in_proj"] = dense(keys[9], 3 * FEATURE_DIM, FEATURE_DIM)   # (96,32),(96,)
    params["mha_out"] = dense(keys[10], FEATURE_DIM, FEATURE_DIM)
    params["ca_q"] = dense(keys[11], FEATURE_DIM, FEATURE_DIM)
    params["ca_k"] = dense(keys[12], FEATURE_DIM, FEATURE_DIM)
    params["ca_v"] = dense(keys[13], FEATURE_DIM, FEATURE_DIM)
    return params


def prepare_params(params):
    """One-time folding + lane-dense packing into a single (136, 128) f32 slab.

    * positional encoding sin(arange(L)) folded into the tou Linear bias
    * single-key MHA value/out projections chained into cross-attention K/V:
        W_f = Wv_mha^T @ Wo^T,  W_k' = W_f @ Wk_ca^T,  W_v' = W_f @ Wv_ca^T
      (biases folded the same way)
    * time/day/weather MLP weights dropped: their outputs cancel (single-key
      softmax == 1) or are never consumed, exactly as in the PyTorch forward.
    """
    def t(w):
        return jnp.asarray(w, jnp.float32).T            # (out, in) -> (in, out)

    def row(b):
        return jnp.asarray(b, jnp.float32).reshape(1, -1)

    D = FEATURE_DIM

    # tou Linear: (x + pos) @ W^T + b == x @ W^T + (pos @ W^T + b)
    w_lin, b_lin = params["linear"]
    w_lin_t = t(w_lin)                                  # (96, 32)
    pos = jnp.sin(jnp.arange(LENGTH, dtype=jnp.float32)).reshape(1, LENGTH)
    b_lin_f = pos @ w_lin_t + row(b_lin)                # (1, 32)

    # holiday MLP
    w_h1_t = t(params["mlp_holiday_1"][0])              # (96, 64)
    b_h1 = row(params["mlp_holiday_1"][1])
    w_h2_t = t(params["mlp_holiday_2"][0])              # (64, 32)
    b_h2 = row(params["mlp_holiday_2"][1])

    # MHA (single key): fusion == out_proj(V_in_proj(feat_holiday))
    mha_w, mha_b = params["mha_in_proj"]
    wv_mha_t = t(mha_w[2 * D:3 * D])                    # (32, 32)
    bv_mha = row(mha_b[2 * D:3 * D])
    wo_t = t(params["mha_out"][0])
    bo = row(params["mha_out"][1])
    w_f = wv_mha_t @ wo_t                               # (32, 32)
    b_f = bv_mha @ wo_t + bo                            # (1, 32)

    # cross-attention projections; fold the fusion chain into K / V
    wq_t, bq = t(params["ca_q"][0]), row(params["ca_q"][1])
    wk_t, bk = t(params["ca_k"][0]), row(params["ca_k"][1])
    wv_t, bv = t(params["ca_v"][0]), row(params["ca_v"][1])
    w_k_fold = w_f @ wk_t
    b_k_fold = b_f @ wk_t + bk
    w_v_fold = w_f @ wv_t
    b_v_fold = b_f @ wv_t + bv

    slab = jnp.zeros((_ROWS, _LANES), jnp.float32)
    slab = slab.at[_R_W1:_R_W1 + LENGTH, 0:D].set(w_lin_t)
    slab = slab.at[_R_W1:_R_W1 + LENGTH, D:D + HIDDEN].set(w_h1_t)
    slab = slab.at[_R_W1:_R_W1 + HIDDEN, 3 * D:4 * D].set(w_h2_t)
    slab = slab.at[_R_QKV:_R_QKV + D, 0:D].set(wq_t)
    slab = slab.at[_R_QKV:_R_QKV + D, D:2 * D].set(w_k_fold)
    slab = slab.at[_R_QKV:_R_QKV + D, 2 * D:3 * D].set(w_v_fold)
    slab = slab.at[_R_BIAS + 0, 0:D].set(b_lin_f[0])
    slab = slab.at[_R_BIAS + 0, D:D + HIDDEN].set(b_h1[0])
    slab = slab.at[_R_BIAS + 0, 3 * D:4 * D].set(b_h2[0])
    slab = slab.at[_R_BIAS + 1, 0:D].set(bq[0])
    slab = slab.at[_R_BIAS + 1, D:2 * D].set(b_k_fold[0])
    slab = slab.at[_R_BIAS + 1, 2 * D:3 * D].set(b_v_fold[0])
    return slab


@jax.jit
def time_sensitive_module(tou, time, day, holiday, weather, packed_weights):
    # time/day/weather are accepted for interface parity with the PyTorch
    # forward; their MLP outputs cancel inside the single-key MHA softmax
    # (time=Q, day=K) or are never consumed (weather), so they do not affect
    # the result.
    del time, day, weather
    B = tou.shape[0]
    x = jnp.concatenate([tou, holiday], axis=0)          # (2B, 96): one input DMA

    vmem = pl.BlockSpec(memory_space=pltpu.MemorySpace.VMEM)
    out = pl.pallas_call(
        tsm_kernel,
        out_shape=jax.ShapeDtypeStruct((B, FEATURE_DIM), jnp.float32),
        in_specs=[vmem, vmem],
        out_specs=vmem,
    )(x, packed_weights)

    # PyTorch CrossAttention returns output.squeeze(1) on a (1, B, D) tensor:
    out = out[None, :, :]            # (1, B, D)
    if B == 1:
        out = out[:, 0, :]           # squeeze(1) only fires when B == 1
    return out


if __name__ == "__main__":
    key = jax.random.PRNGKey(0)
    k_in, k_p = jax.random.split(key)
    ks = jax.random.split(k_in, 5)
    tou = jax.random.normal(ks[0], (BATCH, LENGTH), jnp.float32)
    time = jax.random.normal(ks[1], (BATCH, LENGTH), jnp.float32)
    day = jax.random.normal(ks[2], (BATCH, LENGTH), jnp.float32)
    holiday = jax.random.normal(ks[3], (BATCH, LENGTH), jnp.float32)
    weather = jax.random.normal(ks[4], (BATCH, LENGTH), jnp.float32)

    params = init_params(k_p)
    packed = jax.block_until_ready(prepare_params(params))   # one-time fold + pack

    out = time_sensitive_module(tou, time, day, holiday, weather, packed)
    jax.block_until_ready(out)
    assert out.shape == (1, BATCH, FEATURE_DIM)
    print("KERNEL_OK")
</pallas_src>

<mosaic_0001>
module attributes {stable_mosaic.version = 11 : i64} {
  func.func @tsm_kernel(%arg0: memref<4x96xf32, #tpu.memory_space<vmem>>, %arg1: memref<136x128xf32, #tpu.memory_space<vmem>>, %arg2: memref<2x32xf32, #tpu.memory_space<vmem>>) attributes {dimension_semantics = [], scalar_prefetch = 0 : i64, scratch_operands = 0 : i64, tpu.core_type = #tpu.core_type<tc>} {
    %c0 = arith.constant 0 : index
    %c0_0 = arith.constant 0 : index
    %0 = vector.load %arg1[%c0, %c0_0] : memref<136x128xf32, #tpu.memory_space<vmem>>, vector<96x128xf32>
    %c96 = arith.constant 96 : index
    %c0_1 = arith.constant 0 : index
    %1 = vector.load %arg1[%c96, %c0_1] : memref<136x128xf32, #tpu.memory_space<vmem>>, vector<32x128xf32>
    %c128 = arith.constant 128 : index
    %c0_2 = arith.constant 0 : index
    %2 = vector.load %arg1[%c128, %c0_2] : memref<136x128xf32, #tpu.memory_space<vmem>>, vector<2x128xf32>
    %3 = vector.extract_strided_slice %2 {offsets = [0, 0], sizes = [1, 128], strides = [1, 1]} : vector<2x128xf32> to vector<1x128xf32>
    %4 = vector.extract_strided_slice %2 {offsets = [1, 0], sizes = [1, 128], strides = [1, 1]} : vector<2x128xf32> to vector<1x128xf32>
    %c0_3 = arith.constant 0 : index
    %c0_4 = arith.constant 0 : index
    %5 = vector.load %arg0[%c0_3, %c0_4] : memref<4x96xf32, #tpu.memory_space<vmem>>, vector<4x96xf32>
    %cst = arith.constant dense<0.000000e+00> : vector<4x128xf32>
    %6 = tpu.matmul %5, %0, %cst {dimension_numbers = #tpu.dot_dimension_numbers<[1], [0], [0], [1], [0, 0, 1, 1], [], []>} : vector<4x96xf32>, vector<96x128xf32>, vector<4x128xf32> -> vector<4x128xf32>
    %7 = vector.broadcast %3 : vector<1x128xf32> to vector<4x128xf32>
    %8 = arith.addf %6, %7 : vector<4x128xf32>
    %9 = vector.extract_strided_slice %8 {offsets = [0, 0], sizes = [2, 32], strides = [1, 1]} : vector<4x128xf32> to vector<2x32xf32>
    %cst_5 = arith.constant 0.000000e+00 : f32
    %10 = vector.broadcast %cst_5 : f32 to vector<2x32xf32>
    %11 = arith.maximumf %9, %10 : vector<2x32xf32>
    %12 = vector.extract_strided_slice %8 {offsets = [2, 32], sizes = [2, 64], strides = [1, 1]} : vector<4x128xf32> to vector<2x64xf32>
    %cst_6 = arith.constant 0.000000e+00 : f32
    %13 = vector.broadcast %cst_6 : f32 to vector<2x64xf32>
    %14 = arith.maximumf %12, %13 : vector<2x64xf32>
    %15 = vector.extract_strided_slice %0 {offsets = [0, 96], sizes = [64, 32], strides = [1, 1]} : vector<96x128xf32> to vector<64x32xf32>
    %cst_7 = arith.constant dense<0.000000e+00> : vector<2x32xf32>
    %16 = tpu.matmul %14, %15, %cst_7 {dimension_numbers = #tpu.dot_dimension_numbers<[1], [0], [0], [1], [0, 0, 1, 1], [], []>} : vector<2x64xf32>, vector<64x32xf32>, vector<2x32xf32> -> vector<2x32xf32>
    %17 = vector.extract_strided_slice %3 {offsets = [0, 96], sizes = [1, 32], strides = [1, 1]} : vector<1x128xf32> to vector<1x32xf32>
    %18 = vector.broadcast %17 : vector<1x32xf32> to vector<2x32xf32>
    %19 = arith.addf %16, %18 : vector<2x32xf32>
    %20 = tpu.concatenate %11, %19 in 0 : vector<2x32xf32>, vector<2x32xf32> -> vector<4x32xf32>
    %cst_8 = arith.constant dense<0.000000e+00> : vector<4x128xf32>
    %21 = tpu.matmul %20, %1, %cst_8 {dimension_numbers = #tpu.dot_dimension_numbers<[1], [0], [0], [1], [0, 0, 1, 1], [], []>} : vector<4x32xf32>, vector<32x128xf32>, vector<4x128xf32> -> vector<4x128xf32>
    %22 = vector.broadcast %4 : vector<1x128xf32> to vector<4x128xf32>
    %23 = arith.addf %21, %22 : vector<4x128xf32>
    %24 = vector.extract_strided_slice %23 {offsets = [0, 0], sizes = [2, 32], strides = [1, 1]} : vector<4x128xf32> to vector<2x32xf32>
    %25 = vector.extract_strided_slice %23 {offsets = [2, 32], sizes = [2, 32], strides = [1, 1]} : vector<4x128xf32> to vector<2x32xf32>
    %26 = vector.extract_strided_slice %23 {offsets = [2, 64], sizes = [2, 32], strides = [1, 1]} : vector<4x128xf32> to vector<2x32xf32>
    %cst_9 = arith.constant dense<0.000000e+00> : vector<2x2xf32>
    %27 = tpu.matmul %24, %25, %cst_9 {dimension_numbers = #tpu.dot_dimension_numbers<[1], [1], [0], [0], [0, 0, 1, 0], [], []>} : vector<2x32xf32>, vector<2x32xf32>, vector<2x2xf32> -> vector<2x2xf32>
    %cst_10 = arith.constant 3.200000e+01 : f32
    %28 = math.sqrt %cst_10 : f32
    %29 = vector.broadcast %28 : f32 to vector<2x2xf32>
    %30 = arith.divf %27, %29 : vector<2x2xf32>
    %cst_11 = arith.constant dense<0xFF800000> : vector<2xf32>
    %31 = vector.multi_reduction <maximumf>, %30, %cst_11 [1] : vector<2x2xf32> to vector<2xf32>
    %32 = vector.shape_cast %31 : vector<2xf32> to vector<2x1xf32>
    %33 = vector.broadcast %32 : vector<2x1xf32> to vector<2x2xf32>
    %34 = arith.subf %30, %33 : vector<2x2xf32>
    %35 = math.exp %34 : vector<2x2xf32>
    %cst_12 = arith.constant dense<0.000000e+00> : vector<2xf32>
    %36 = vector.multi_reduction <add>, %35, %cst_12 [1] : vector<2x2xf32> to vector<2xf32>
    %37 = vector.shape_cast %36 : vector<2xf32> to vector<2x1xf32>
    %38 = vector.broadcast %37 : vector<2x1xf32> to vector<2x2xf32>
    %39 = arith.divf %35, %38 : vector<2x2xf32>
    %cst_13 = arith.constant dense<0.000000e+00> : vector<2x32xf32>
    %40 = tpu.matmul %39, %26, %cst_13 {dimension_numbers = #tpu.dot_dimension_numbers<[1], [0], [0], [1], [0, 0, 1, 1], [], []>} : vector<2x2xf32>, vector<2x32xf32>, vector<2x32xf32> -> vector<2x32xf32>
    %c0_14 = arith.constant 0 : index
    %c0_15 = arith.constant 0 : index
    %41 = vector.load %arg2[%c0_14, %c0_15] : memref<2x32xf32, #tpu.memory_space<vmem>>, vector<2x32xf32>
    tpu.vector_store %arg2[%c0_14, %c0_15], %40 {strides = array<i32>} : memref<2x32xf32, #tpu.memory_space<vmem>>, vector<2x32xf32>,
    return
  }
}

</mosaic_0001>

<bundles_post_ra>
// kernel: time_sensitive_module.1
= control target key start
LH: loop header
LB: loop body
LE: loop exit
PB: predicated region body
PF: predicated region fallthrough
CT: control target
= control target key end

     0   :  { %7 = vsyncpa [#allocation3], 0  ;;  %s758_s0 = inlined_call_operand.vmem [shape: f32[4,96], index: 0, kind: input, shape index: {}]   ;;  %s759_s1 = inlined_call_operand.hbm [shape: f32[136,128], index: 1, kind: input, shape index: {}]   ;;  %s760_s2 = inlined_call_operand.hbm [shape: f32[2,32], index: 2, kind: output, shape index: {}]  }
   0x1   :  { %8 = vsyncpa [#allocation4], 0  ;;  %s668_s9 = smov [#allocation2]  }
   0x2   :  { %s16_s10 = sshll.u32 %s668_s9, 4  ;;  %s17_s10 = int_to_ptr.vmem [resolvable:$true] %s16_s10 }
   0x3   :  { %s632_s11 = scalar_lea.vmem %s17_s10, 2176  ;;  %p637_p1 = scmp.lt.s32.totalorder %s17_s10, %s17_s10 }
   0x4   :  { %p633_p0 = scmp.ne.s32.totalorder %s17_s10, %s632_s11  ;;  %p638_p2 = scmp.lt.s32.totalorder %s632_s11, %s632_s11 }
   0x6   :  { %p639_p3 = por %p638_p2, %p637_p1 }
   0x8   :  { %p640_p4 = pnand %p639_p3, %p633_p0 }
   0xa   :  { %643 = shalt.err (!%p640_p4)
}
   0xb   :  { %s669_s12 = smov 128   ;;  %s670_s13 = smov 8  }
   0xc   :  { %22 = dma.hbm_to_vmem [thread:$0]  %s759_s1, 2176, %s17_s10, [#allocation3], %s669_s12, %s669_s12, %s670_s13  }
   0xd   :  { %664 = dma.done.wait [#allocation3], 2176  }
   0xe   :  { %665 = vsyncadd [#allocation3], 4294965120  ;;  %v671_v0 = vmov 0.0   ;;  %vm672_vm0 = vmmov 0   ;;  %v37_v1 = vld [vmem:[#allocation2 + $0x58] sm:$0xff]  ;;  %v36_v2 = vld [vmem:[#allocation2 + $0x50] sm:$0xff]  ;;  %v44_v8 = vlaneseq }
   0xf   :  { %544 = vmatprep.subr.mxu0 %v671_v0  ;;  %568 = vmatprep.mubr.msk.f32.mxu0 %vm672_vm0, %v671_v0  ;;  %v33_v3 = vld [vmem:[#allocation2 + $0x38] sm:$0xff]  ;;  %v35_v4 = vld [vmem:[#allocation2 + $0x48] sm:$0xff]  ;;  %s673_s1 = smov 32   ;;  %v34_v6 = vld [vmem:[#allocation2 + $0x40] sm:$0xff]  ;;  %vm48_vm1 = vcmask 785408   ;;  %vm163_vm2 = vcmask 523264  }
  0x10   :  { %571 = vmatprep.subr.mxu1 %v671_v0  ;;  %587 = vmatprep.mubr.msk.f32.mxu1 %vm672_vm0, %v671_v0  ;;  %v31_v5 = vld [vmem:[#allocation2 + $0x28] sm:$0xff]  ;;  %v32_v7 = vld [vmem:[#allocation2 + $0x30] sm:$0xff]  ;;  %v30_v9 = vld [vmem:[#allocation2 + $0x20] sm:$0xff]  ;;  %v709_v11 = vshrl.u32 %v44_v8, 7  ;;  %vm239_vm3 = vcmask 1041408   ;;  %vm245_vm4 = vcmask 261120  }
  0x11   :  { %545 = vmatpush3.msra.mxu0 %v37_v1  ;;  %149 = vrot.lane.b32.xlu0 %v33_v3, %s673_s1  ;;  %v29_v10 = vld [vmem:[#allocation2 + $0x18] sm:$0xff]  ;;  %v28_v12 = vld [vmem:[#allocation2 + $0x10] sm:$0xff]  ;;  %v27_v13 = vld [vmem:[#allocation2 + $0x8] sm:$0xff]  ;;  %vm399_vm5 = vcmask 9216   ;;  %s675_s18 = smov 64   ;;  %vm413_vm6 = vcmask 15360  }
  0x12   :  { %546 = vmatprep.subr.mxu0 %v671_v0  ;;  %145 = vrot.lane.b32.xlu1 %v31_v5, %s673_s1  ;;  %v46_v14 = vsub.s32 0, %v709_v11  ;;  %v26_v15 = vld [vmem:[#allocation2] sm:$0xff]  ;;  %v41_v32 = vld [vmem:[#allocation2 + $0x78] sm:$0xff]  ;;  %v40_v34 = vld [vmem:[#allocation2 + $0x70] sm:$0xff]  ;;  %v243_v43 = vsub.s32 1, %v709_v11  ;;  %s676_s19 = smov [#allocation5]  }
  0x13   :  { %547 = vmatpush3.msra.mxu0 %v36_v2  ;;  %v717_v16 = vld [vmem:[#allocation2 + $0x80] sm:$0x3]  ;;  %v39_v35 = vld [vmem:[#allocation2 + $0x68] sm:$0xff]  ;;  %s497_s20 = sshll.u32 %s676_s19, 4  ;;  %vm489_vm7 = vcmask 254976   ;;  %s498_s20 = int_to_ptr.vmem [resolvable:$true] %s497_s20 }
  0x14   :  { %548 = vmatprep.subr.mxu0 %v671_v0  ;;  %v47_v17 = vrot.slane %v717_v16, %v46_v14  ;;  %v43_v18 = vld [vmem:[%s758_s0] sm:$0xf]  ;;  %s674_s0 = smov 96   ;;  %v244_v44 = vrot.slane %v717_v16, %v243_v43  ;;  %s644_s21 = scalar_lea.vmem %s498_s20, 32 }
  0x15   :  { %549 = vmatpush3.msra.mxu0 %v35_v4  ;;  %147 = vrot.lane.b32.xlu0 %v32_v7, %s673_s1  ;;  %v38_v36 = vld [vmem:[#allocation2 + $0x60] sm:$0xff]  ;;  %p645_p5 = scmp.ne.s32.totalorder %s498_s20, %s644_s21  ;;  %p649_p6 = scmp.lt.s32.totalorder %s498_s20, %s498_s20 }
  0x16   :  { %550 = vmatprep.subr.mxu0 %v671_v0  ;;  %143 = vrot.lane.b32.xlu1 %v30_v9, %s673_s1  ;;  %p650_p7 = scmp.lt.s32.totalorder %s644_s21, %s644_s21 }
  0x17   :  { %551 = vmatpush3.msra.mxu0 %v34_v6 }
  0x18   :  { %552 = vmatprep.subr.mxu0 %v671_v0  ;;  %p651_p8 = por %p650_p7, %p649_p6 }
  0x19   :  { %553 = vmatpush3.msra.mxu0 %v33_v3  ;;  %141 = vrot.lane.b32.xlu0 %v29_v10, %s673_s1 }
  0x1a   :  { %554 = vmatprep.subr.mxu0 %v671_v0  ;;  %139 = vrot.lane.b32.xlu1 %v28_v12, %s673_s1  ;;  %p652_p9 = pnand %p651_p8, %p645_p5 }
  0x1b   :  { %555 = vmatpush3.msra.mxu0 %v32_v7 }
  0x1c   :  { %556 = vmatprep.subr.mxu0 %v671_v0 }
  0x1d   :  { %557 = vmatpush3.msra.mxu0 %v31_v5  ;;  %137 = vrot.lane.b32.xlu0 %v27_v13, %s673_s1 }
  0x1e   :  { %558 = vmatprep.subr.mxu0 %v671_v0  ;;  %135 = vrot.lane.b32.xlu1 %v26_v15, %s673_s1 }
  0x1f   :  { %559 = vmatpush3.msra.mxu0 %v30_v9 }
  0x20   :  { %560 = vmatprep.subr.mxu0 %v671_v0 }
  0x21   :  { %561 = vmatpush3.msra.mxu0 %v29_v10 }
  0x22   :  { %562 = vmatprep.subr.mxu0 %v671_v0  ;;  %160 = vrot.lane.b32.xlu1 %v47_v17, %s673_s1 }
  0x23   :  { %563 = vmatpush3.msra.mxu0 %v28_v12 }
  0x24   :  { %564 = vmatprep.subr.mxu0 %v671_v0 }
  0x25   :  { %565 = vmatpush3.msra.mxu0 %v27_v13 }
  0x26   :  { %566 = vmatprep.subr.mxu0 %v671_v0 }
  0x27   :  { %567 = vmatpush3.msra.mxu0 %v26_v15 }
  0x28   :  { %569 = vmatmul.mubr.msk.f32.vlgmr.msra.gmra.mxu0 %vm48_vm1, %v43_v18  ;;  %601 = vmatprep.subr.mxu0 %v671_v0 }
  0x29   :  { %603 = vmatprep.mubr.msk.f32.mxu0 %vm672_vm0, %v671_v0 }
  0x83   :  { %v150_v19 = vpop.permute.xlu0 %149 }
  0x84   :  { %572 = vmatpush3.msra.mxu1 %v150_v19  ;;  %v146_v20 = vpop.permute.xlu1 %145 }
  0x85   :  { %573 = vmatprep.subr.mxu1 %v671_v0 }
  0x87   :  { %v148_v21 = vpop.permute.xlu0 %147 }
  0x88   :  { %574 = vmatpush3.msra.mxu1 %v148_v21  ;;  %v144_v22 = vpop.permute.xlu1 %143 }
  0x89   :  { %575 = vmatprep.subr.mxu1 %v671_v0 }
  0x8a   :  { %576 = vmatpush3.msra.mxu1 %v146_v20 }
  0x8b   :  { %577 = vmatprep.subr.mxu1 %v671_v0  ;;  %v142_v23 = vpop.permute.xlu0 %141 }
  0x8c   :  { %578 = vmatpush3.msra.mxu1 %v144_v22  ;;  %v140_v24 = vpop.permute.xlu1 %139 }
  0x8d   :  { %579 = vmatprep.subr.mxu1 %v671_v0 }
  0x8e   :  { %580 = vmatpush3.msra.mxu1 %v142_v23 }
  0x8f   :  { %581 = vmatprep.subr.mxu1 %v671_v0  ;;  %v138_v25 = vpop.permute.xlu0 %137 }
  0x90   :  { %582 = vmatpush3.msra.mxu1 %v140_v24  ;;  %v136_v26 = vpop.permute.xlu1 %135 }
  0x91   :  { %583 = vmatprep.subr.mxu1 %v671_v0 }
  0x92   :  { %584 = vmatpush3.msra.mxu1 %v138_v25 }
  0x93   :  { %585 = vmatprep.subr.mxu1 %v671_v0 }
  0x94   :  { %586 = vmatpush3.msra.mxu1 %v136_v26  ;;  %v161_v37 = vpop.permute.xlu1 %160 }
  0x95   :  { %590 = vmatprep.subr.mxu1 %v671_v0 }
  0xe8   :  { %v118_v27 = vpop.f32.mrf.mxu0 }
  0xe9   :  { %v119_v28 = vadd.f32 %v118_v27, %v47_v17 }
  0xea   :  { %v570_v29 = vpop.f32.mrf.mxu0 }
  0xeb   :  { %v122_v30 = vmax.f32 %v119_v28, 0.0 }
  0xed   :  { %v124_v31 = vrot.slane %v122_v30, 2 }
  0xef   :  { %125 = vrot.lane.b32.xlu0 %v124_v31, %s674_s0 }
 0x161   :  { %v126_v33 = vpop.permute.xlu0 %125 }
 0x162   :  { %588 = vmatmul.mubr.msk.f32.vlgmr.msra.gmra.mxu1 %vm163_vm2, %v126_v33 }
 0x163   :  { %591 = vmatpush3.msra.mxu1 %v41_v32  ;;  %598 = vmatprep.mubr.msk.f32.mxu1 %vm672_vm0, %v671_v0 }
 0x164   :  { %592 = vmatprep.subr.mxu1 %v671_v0 }
 0x165   :  { %593 = vmatpush3.msra.mxu1 %v40_v34 }
 0x166   :  { %594 = vmatprep.subr.mxu1 %v671_v0 }
 0x167   :  { %595 = vmatpush3.msra.mxu1 %v39_v35 }
 0x168   :  { %596 = vmatprep.subr.mxu1 %v671_v0 }
 0x169   :  { %597 = vmatpush3.msra.mxu1 %v38_v36 }
 0x16a   :  { %606 = vmatprep.subr.mxu1 %v671_v0 }
 0x222   :  { %v232_v38 = vpop.f32.mrf.mxu1 }
 0x223   :  { %v233_v39 = vadd.f32 %v232_v38, %v161_v37 }
 0x224   :  { %v589_v40 = vpop.f32.mrf.mxu1 }
 0x225   :  { %v237_v41 = vrot.slane %v233_v39, 6 }
 0x227   :  { %v240_v42 = vsel %vm239_vm3, %v122_v30, %v237_v41 }
 0x228   :  { %599 = vmatmul.mubr.msk.f32.vlgmr.msra.gmra.mxu1 %vm245_vm4, %v240_v42 }
 0x229   :  { %608 = vmatprep.mubr.msk.f32.mxu1 %vm672_vm0, %v671_v0 }
 0x2e8   :  { %v315_v45 = vpop.f32.mrf.mxu1 }
 0x2e9   :  { %v316_v46 = vadd.f32 %v315_v45, %v244_v44 }
 0x2ea   :  { %v600_v47 = vpop.f32.mrf.mxu1 }
 0x2eb   :  { %v320_v48 = vrot.slane %v316_v46, 2 }
 0x2ed   :  { %321 = vrot.lane.b32.xlu0 %v320_v48, %s674_s0 }
 0x35f   :  { %v322_v49 = vpop.permute.xlu0 %321 }
 0x360   :  { %602 = vmatpush3.xpose.msk.msra.mxu0 %vm245_vm4, %v322_v49 }
 0x363   :  { %604 = vmatmul.mubr.msk.f32.vlgmr.msra.gmra.mxu0 %vm245_vm4, %v316_v46 }
 0x423   :  { %v393_v50 = vpop.f32.mrf.mxu0 }
 0x424   :  { %v398_v51 = vmul.f32 0.17677669, %v393_v50 }
 0x425   :  { %v605_v52 = vpop.f32.mrf.mxu0 }
 0x426   :  { %v400_v53 = vsel %vm399_vm5, %v398_v51, -inf }
 0x427   :  { %401 = vmax.xlane.f32.xlu1 %v400_v53 }
 0x4b0   :  { %v402_v54 = vpop.xlane.xlu1 %401 }
 0x4b1   :  { %v403_v55 = vsub.f32 %v398_v51, %v402_v54 }
 0x4b3   :  { %v404_v56 = vmul.f32 1.442695, %v403_v55 }
 0x4b5   :  { %620 = vpow2.f32 %v404_v56 }
 0x4c2   :  { %v621_v57 = vpop.eup %620 }
 0x4c3   :  { %v406_v58 = vsel %vm399_vm5, %v621_v57, 0.0 }
 0x4c4   :  { %407 = vadd.xlane.f32.xlu0 %v406_v58 }
 0x4da   :  { %411 = vrot.lane.b32.xlu0 %v320_v48, %s675_s18 }
 0x54d   :  { %v408_v59 = vpop.xlane.xlu0 %407 }
 0x54e   :  { %622 = vrcp.f32 %v408_v59 }
 0x551   :  { %v412_v60 = vpop.permute.xlu0 %411 }
 0x552   :  { %607 = vmatpush3.msk.msra.mxu1 %vm239_vm3, %v412_v60 }
 0x55b   :  { %v623_v61 = vpop.eup %622 }
 0x55c   :  { %v410_v62 = vmul.f32 %v623_v61, %v621_v57 }
 0x55e   :  { %609 = vmatmul.mubr.msk.f32.vlgmr.msra.gmra.mxu1 %vm413_vm6, %v410_v62 }
 0x61e   :  { %v485_v63 = vpop.f32.mrf.mxu1 }
 0x61f   :  { %490 = vst.msk [vmem:[#allocation5] sm:$0x3] %vm489_vm7, %v485_v63 }
 0x620   :  { %v610_v0 = vpop.f32.mrf.mxu1 }
 0x621   :  { %655 = shalt.err (!%p652_p9)
}
 0x622   :  { %500 = dma.vmem_to_hbm [thread:$0]  %s498_s20, 32, %s760_s2, [#allocation4]  }
 0x623   :  { %666 = dma.done.wait [#allocation4], 32  }
 0x624   :  { %667 = vsyncadd [#allocation4], 4294967264 }
 0x625   :  { %504 = vsyncpa [#allocation3], 1 }
 0x626   :  { %505 = vsyncpa [#allocation4], 1 }

</bundles_post_ra>
